<compile_context>
chip_gen: v6e
topology: v6e:2x2x1
jax: 0.10.0
libtpu: 0.0.40
codegen_flags: <defaults>
</compile_context>

<pallas_src>
import functools

import jax
import jax.numpy as jnp
from jax import lax
from jax.experimental import pallas as pl
from jax.experimental.pallas import tpu as pltpu


def _global_attention_kernel(a_ref, b_ref, c_ref,
                             wq_ref, bq_ref, wk_ref, bk_ref, wv_ref, bv_ref,
                             gamma_ref, out_ref, *, tq):
    """Per-(batch, query-tile) body.

    Block shapes (batch dim squeezed by the BlockSpecs):
      a_ref, b_ref : (C, N)   channels-first features (resident per batch)
      c_ref        : (1, N)   per-pixel mask
      w*_ref       : (C, C)   1x1 conv weights, (out_ch, in_ch)
      b*_ref       : (C, 1)   biases (lane-broadcast)
      gamma_ref    : (1, 1)
      out_ref      : (C, TQ)  output tile for this query block
    """
    f32 = jnp.float32
    qi = pl.program_id(1)
    q0 = pl.multiple_of(qi * tq, tq)

    a_full = a_ref[...]                       # (C, N)
    b_full = b_ref[...]                       # (C, N)
    a_q = a_ref[:, pl.ds(q0, tq)]             # (C, TQ)  query slice of 'a'
    c_q = c_ref[:, pl.ds(q0, tq)]             # (1, TQ)  mask at query pixels

    wq = wq_ref[...]
    wk = wk_ref[...]
    wv = wv_ref[...]
    bq = bq_ref[...]
    bk = bk_ref[...]
    bv = bv_ref[...]
    gamma = gamma_ref[0, 0]

    # 1x1 convolutions == per-pixel linear maps, channels-first: y = W @ x + b
    q = jnp.dot(wq, a_q, preferred_element_type=f32) + bq        # (C, TQ)
    k = jnp.dot(wk, b_full, preferred_element_type=f32) + bk     # (C, N)
    v = jnp.dot(wv, a_full, preferred_element_type=f32) + bv     # (C, N)

    # Mask pruning: logits[i, j] = <q_i, k_j> * c[query i].  Fold the row-wise
    # scale into q (lane-broadcast) so no (1,TQ)->(TQ,1) transpose is needed.
    qs = q * c_q                                                  # (C, TQ)

    # Feature-similarity tile (TQ, N); only a tiny (C, TQ) transpose is done.
    logits = jnp.dot(qs.T, k, preferred_element_type=f32)         # (TQ, N)

    # Softmax over keys (dim = -1).
    m = jnp.max(logits, axis=-1, keepdims=True)
    e = jnp.exp(logits - m)
    denom = jnp.sum(e, axis=-1, keepdims=True)
    attn = e * pl.reciprocal(denom, approx=True)                  # (TQ, N)

    # Value aggregation: feat[c, i] = sum_j v[c, j] * attn[i, j]
    # (the only K=N matmul: bf16 inputs, f32 accumulation).
    feat = lax.dot_general(
        v.astype(jnp.bfloat16), attn.astype(jnp.bfloat16),
        (((1,), (1,)), ((), ())),
        preferred_element_type=f32)                               # (C, TQ)

    # out = a * c + gamma * (1 - c) * attended
    out = a_q * c_q + gamma * (1.0 - c_q) * feat
    out_ref[...] = out.astype(out_ref.dtype)


def global_attention(a, b, c, params, rate=1, tq=None):
    """a, b: (B, C, W, H) NCHW.  c: (B, 1, Hc, Wc) mask (Hc = down_rate * W)."""
    B, C, W, H = a.shape
    N = W * H
    down_rate = c.shape[2] // W

    # F.interpolate(c, scale_factor=1/down_rate * rate, mode='nearest'):
    # for integer down_rate and rate == 1 this is exact nearest-neighbor
    # downsampling, i.e. strided indexing.  Done in JAX glue (pure indexing).
    # TODO(synk): non-integer rate/down_rate combinations of F.interpolate are
    # not reproduced exactly by this strided slice.
    step = max(down_rate // rate, 1)
    c_res = c[:, :, ::step, ::step]                        # (B, 1, W, H)

    # Channels-first, lane-dense: pure reshapes, no transposes.
    a_flat = a.reshape(B, C, N)                            # (B, C, N)
    b_flat = b.reshape(B, C, N)                            # (B, C, N)
    c_flat = c_res.reshape(B, 1, N)                        # (B, 1, N)

    wq, bq, wk, bk, wv, bv, gamma = params
    bq2 = bq.reshape(C, 1)
    bk2 = bk.reshape(C, 1)
    bv2 = bv.reshape(C, 1)
    gamma2 = gamma.reshape(1, 1)

    # Query-tile size: 128 keeps the (TQ, N) softmax tile VMEM-safe on
    # v5e/v6e/v7x; fall back to a single tile if N is not 128-aligned.
    if tq is None:
        tq = 128 if (N % 128 == 0) else N
    assert N % tq == 0
    nq = N // tq

    feat_spec = pl.BlockSpec((None, C, N), lambda bi, qi: (bi, 0, 0))
    mask_spec = pl.BlockSpec((None, 1, N), lambda bi, qi: (bi, 0, 0))
    w_spec = pl.BlockSpec((C, C), lambda bi, qi: (0, 0))
    bias_spec = pl.BlockSpec((C, 1), lambda bi, qi: (0, 0))
    g_spec = pl.BlockSpec((1, 1), lambda bi, qi: (0, 0))
    out_spec = pl.BlockSpec((None, C, tq), lambda bi, qi: (bi, 0, qi))

    kernel = functools.partial(_global_attention_kernel, tq=tq)

    out_flat = pl.pallas_call(
        kernel,
        out_shape=jax.ShapeDtypeStruct((B, C, N), a.dtype),
        grid=(B, nq),
        in_specs=[feat_spec, feat_spec, mask_spec,
                  w_spec, bias_spec, w_spec, bias_spec, w_spec, bias_spec,
                  g_spec],
        out_specs=out_spec,
        compiler_params=pltpu.CompilerParams(
            dimension_semantics=("parallel", "parallel"),
            vmem_limit_bytes=32 * 1024 * 1024),
    )(a_flat, b_flat, c_flat, wq, bq2, wk, bk2, wv, bv2, gamma2)

    # Back to NCHW: pure reshape, no transpose.
    return out_flat.reshape(B, C, W, H)


def global_attention_reference(a, b, c, params, rate=1):
    """Pure-JAX replica of the PyTorch forward (for validation)."""
    B, C, W, H = a.shape
    N = W * H
    down_rate = c.shape[2] // W
    step = max(down_rate // rate, 1)
    c_res = c[:, :, ::step, ::step]                         # (B, 1, W, H)

    wq, bq, wk, bk, wv, bv, gamma = params

    def conv1x1(x, w, bias):                                # x: (B, C, W, H)
        return jnp.einsum('oc,bcwh->bowh', w, x) + bias[None, :, None, None]

    proj_q = conv1x1(a, wq, bq).reshape(B, C, N).transpose(0, 2, 1)   # (B, N, C)
    proj_k = conv1x1(b, wk, bk).reshape(B, C, N)                      # (B, C, N)
    sim = jnp.einsum('bnc,bcm->bnm', proj_q, proj_k)                  # (B, N, N)

    mask = c_res.reshape(B, 1, N)                                     # (B, 1, N)
    mask = jnp.tile(mask, (1, N, 1)).transpose(0, 2, 1)               # (B, N, N)
    logits = sim * mask
    attn = jax.nn.softmax(logits, axis=-1)

    val = conv1x1(a, wv, bv).reshape(B, C, N)                         # (B, C, N)
    feat = jnp.einsum('bcn,bmn->bcm', val, attn)                      # (B, C, N)
    out = feat.reshape(B, C, W, H)
    out = a * c_res + gamma[0] * (1.0 - c_res) * out
    return out


if __name__ == "__main__":
    B, C, W, H = 2, 4, 16, 16
    key = jax.random.PRNGKey(0)
    k_a, k_b, k_c, k_wq, k_bq, k_wk, k_bk, k_wv, k_bv = jax.random.split(key, 9)

    a = jax.random.normal(k_a, (B, C, W, H), dtype=jnp.float32)
    b = jax.random.normal(k_b, (B, C, W, H), dtype=jnp.float32)
    # mask 'c' at 2x spatial resolution (down_rate = 2), single channel, [0, 1]
    c = jax.random.uniform(k_c, (B, 1, 2 * W, 2 * H), dtype=jnp.float32)

    # deterministic parameter init (Conv2d 1x1 weights squeezed to (C, C))
    wq = 0.1 * jax.random.normal(k_wq, (C, C), dtype=jnp.float32)
    bq = 0.1 * jax.random.normal(k_bq, (C,), dtype=jnp.float32)
    wk = 0.1 * jax.random.normal(k_wk, (C, C), dtype=jnp.float32)
    bk = 0.1 * jax.random.normal(k_bk, (C,), dtype=jnp.float32)
    wv = 0.1 * jax.random.normal(k_wv, (C, C), dtype=jnp.float32)
    bv = 0.1 * jax.random.normal(k_bv, (C,), dtype=jnp.float32)
    gamma = jnp.array([1.0], dtype=jnp.float32)
    params = (wq, bq, wk, bk, wv, bv, gamma)

    out = global_attention(a, b, c, params)
    out = jax.block_until_ready(out)

    ref = global_attention_reference(a, b, c, params)
    ref = jax.block_until_ready(ref)

    assert out.shape == (B, C, W, H)
    assert out.dtype == a.dtype
    # Tolerance reflects bf16 attention probabilities / values in the
    # aggregation matmul (per performance review) + approx reciprocal.
    assert jnp.allclose(out, ref, atol=2e-2, rtol=2e-2), \
        f"max abs err {jnp.max(jnp.abs(out - ref))}"

    print("KERNEL_OK")
</pallas_src>

<mosaic_0001>
module attributes {stable_mosaic.version = 11 : i64} {
  func.func @_global_attention_kernel(%arg0: i32, %arg1: i32, %arg2: memref<1x4x256xf32, #tpu.memory_space<vmem>>, %arg3: memref<1x4x256xf32, #tpu.memory_space<vmem>>, %arg4: memref<1x1x256xf32, #tpu.memory_space<vmem>>, %arg5: memref<4x4xf32, #tpu.memory_space<vmem>>, %arg6: memref<4x1xf32, #tpu.memory_space<vmem>>, %arg7: memref<4x4xf32, #tpu.memory_space<vmem>>, %arg8: memref<4x1xf32, #tpu.memory_space<vmem>>, %arg9: memref<4x4xf32, #tpu.memory_space<vmem>>, %arg10: memref<4x1xf32, #tpu.memory_space<vmem>>, %arg11: memref<1x1xf32, #tpu.memory_space<vmem>>, %arg12: memref<1x4x128xf32, #tpu.memory_space<vmem>>) attributes {dimension_semantics = [#tpu.dimension_semantics<parallel>, #tpu.dimension_semantics<parallel>], iteration_bounds = array<i64: 2, 2>, scalar_prefetch = 0 : i64, scratch_operands = 0 : i64, tpu.core_type = #tpu.core_type<tc>, window_params = [{transform_indices = @transform_0, window_bounds = array<i64: 1, 4, 256>}, {transform_indices = @transform_1, window_bounds = array<i64: 1, 4, 256>}, {transform_indices = @transform_2, window_bounds = array<i64: 1, 1, 256>}, {pipeline_mode = #tpu.pipeline_mode<synchronous>, transform_indices = @transform_3, window_bounds = array<i64: 4, 4>}, {pipeline_mode = #tpu.pipeline_mode<synchronous>, transform_indices = @transform_4, window_bounds = array<i64: 4, 1>}, {pipeline_mode = #tpu.pipeline_mode<synchronous>, transform_indices = @transform_5, window_bounds = array<i64: 4, 4>}, {pipeline_mode = #tpu.pipeline_mode<synchronous>, transform_indices = @transform_6, window_bounds = array<i64: 4, 1>}, {pipeline_mode = #tpu.pipeline_mode<synchronous>, transform_indices = @transform_7, window_bounds = array<i64: 4, 4>}, {pipeline_mode = #tpu.pipeline_mode<synchronous>, transform_indices = @transform_8, window_bounds = array<i64: 4, 1>}, {pipeline_mode = #tpu.pipeline_mode<synchronous>, transform_indices = @transform_9, window_bounds = array<i64: 1, 1>}, {transform_indices = @transform_10, window_bounds = array<i64: 1, 4, 128>}]} {
    %c128_i32 = arith.constant 128 : i32
    %0 = arith.muli %arg1, %c128_i32 : i32
    %1 = tpu.assume_multiple %0, 128 : i32
    %c0 = arith.constant 0 : index
    %c0_0 = arith.constant 0 : index
    %c0_1 = arith.constant 0 : index
    %2 = vector.load %arg2[%c0, %c0_0, %c0_1] : memref<1x4x256xf32, #tpu.memory_space<vmem>>, vector<1x4x256xf32>
    %3 = vector.shape_cast %2 : vector<1x4x256xf32> to vector<4x256xf32>
    %c0_2 = arith.constant 0 : index
    %c0_3 = arith.constant 0 : index
    %c0_4 = arith.constant 0 : index
    %4 = vector.load %arg3[%c0_2, %c0_3, %c0_4] : memref<1x4x256xf32, #tpu.memory_space<vmem>>, vector<1x4x256xf32>
    %5 = vector.shape_cast %4 : vector<1x4x256xf32> to vector<4x256xf32>
    %c0_5 = arith.constant 0 : index
    %c0_6 = arith.constant 0 : index
    %6 = arith.index_cast %1 : i32 to index
    %7 = vector.load %arg2[%c0_5, %c0_6, %6] : memref<1x4x256xf32, #tpu.memory_space<vmem>>, vector<1x4x128xf32>
    %8 = vector.shape_cast %7 : vector<1x4x128xf32> to vector<4x128xf32>
    %c0_7 = arith.constant 0 : index
    %c0_8 = arith.constant 0 : index
    %9 = arith.index_cast %1 : i32 to index
    %10 = vector.load %arg4[%c0_7, %c0_8, %9] : memref<1x1x256xf32, #tpu.memory_space<vmem>>, vector<1x1x128xf32>
    %11 = vector.shape_cast %10 : vector<1x1x128xf32> to vector<1x128xf32>
    %c0_9 = arith.constant 0 : index
    %c0_10 = arith.constant 0 : index
    %12 = vector.load %arg5[%c0_9, %c0_10] : memref<4x4xf32, #tpu.memory_space<vmem>>, vector<4x4xf32>
    %c0_11 = arith.constant 0 : index
    %c0_12 = arith.constant 0 : index
    %13 = vector.load %arg7[%c0_11, %c0_12] : memref<4x4xf32, #tpu.memory_space<vmem>>, vector<4x4xf32>
    %c0_13 = arith.constant 0 : index
    %c0_14 = arith.constant 0 : index
    %14 = vector.load %arg9[%c0_13, %c0_14] : memref<4x4xf32, #tpu.memory_space<vmem>>, vector<4x4xf32>
    %c0_15 = arith.constant 0 : index
    %c0_16 = arith.constant 0 : index
    %15 = vector.load %arg6[%c0_15, %c0_16] : memref<4x1xf32, #tpu.memory_space<vmem>>, vector<4x1xf32>
    %c0_17 = arith.constant 0 : index
    %c0_18 = arith.constant 0 : index
    %16 = vector.load %arg8[%c0_17, %c0_18] : memref<4x1xf32, #tpu.memory_space<vmem>>, vector<4x1xf32>
    %c0_19 = arith.constant 0 : index
    %c0_20 = arith.constant 0 : index
    %17 = vector.load %arg10[%c0_19, %c0_20] : memref<4x1xf32, #tpu.memory_space<vmem>>, vector<4x1xf32>
    %c0_21 = arith.constant 0 : index
    %c0_22 = arith.constant 0 : index
    %18 = vector.load %arg11[%c0_21, %c0_22] : memref<1x1xf32, #tpu.memory_space<vmem>>, vector<1x1xf32>
    %19 = vector.extract %18[0, 0] : f32 from vector<1x1xf32>
    %cst = arith.constant dense<0.000000e+00> : vector<4x128xf32>
    %20 = tpu.matmul %12, %8, %cst {dimension_numbers = #tpu.dot_dimension_numbers<[1], [0], [0], [1], [0, 0, 1, 1], [], []>} : vector<4x4xf32>, vector<4x128xf32>, vector<4x128xf32> -> vector<4x128xf32>
    %21 = vector.broadcast %15 : vector<4x1xf32> to vector<4x128xf32>
    %22 = arith.addf %20, %21 : vector<4x128xf32>
    %cst_23 = arith.constant dense<0.000000e+00> : vector<4x256xf32>
    %23 = tpu.matmul %13, %5, %cst_23 {dimension_numbers = #tpu.dot_dimension_numbers<[1], [0], [0], [1], [0, 0, 1, 1], [], []>} : vector<4x4xf32>, vector<4x256xf32>, vector<4x256xf32> -> vector<4x256xf32>
    %24 = vector.broadcast %16 : vector<4x1xf32> to vector<4x256xf32>
    %25 = arith.addf %23, %24 : vector<4x256xf32>
    %cst_24 = arith.constant dense<0.000000e+00> : vector<4x256xf32>
    %26 = tpu.matmul %14, %3, %cst_24 {dimension_numbers = #tpu.dot_dimension_numbers<[1], [0], [0], [1], [0, 0, 1, 1], [], []>} : vector<4x4xf32>, vector<4x256xf32>, vector<4x256xf32> -> vector<4x256xf32>
    %27 = vector.broadcast %17 : vector<4x1xf32> to vector<4x256xf32>
    %28 = arith.addf %26, %27 : vector<4x256xf32>
    %29 = vector.broadcast %11 : vector<1x128xf32> to vector<4x128xf32>
    %30 = arith.mulf %22, %29 : vector<4x128xf32>
    %31 = tpu.transpose %30, [1, 0] : vector<4x128xf32> -> vector<128x4xf32>
    %cst_25 = arith.constant dense<0.000000e+00> : vector<128x256xf32>
    %32 = tpu.matmul %31, %25, %cst_25 {dimension_numbers = #tpu.dot_dimension_numbers<[1], [0], [0], [1], [0, 0, 1, 1], [], []>} : vector<128x4xf32>, vector<4x256xf32>, vector<128x256xf32> -> vector<128x256xf32>
    %cst_26 = arith.constant dense<0xFF800000> : vector<128xf32>
    %33 = vector.multi_reduction <maximumf>, %32, %cst_26 [1] : vector<128x256xf32> to vector<128xf32>
    %34 = vector.shape_cast %33 : vector<128xf32> to vector<128x1xf32>
    %35 = vector.broadcast %34 : vector<128x1xf32> to vector<128x256xf32>
    %36 = arith.subf %32, %35 : vector<128x256xf32>
    %37 = math.exp %36 : vector<128x256xf32>
    %cst_27 = arith.constant dense<0.000000e+00> : vector<128xf32>
    %38 = vector.multi_reduction <add>, %37, %cst_27 [1] : vector<128x256xf32> to vector<128xf32>
    %39 = vector.shape_cast %38 : vector<128xf32> to vector<128x1xf32>
    %40 = tpu.reciprocal %39 {approx = true} : vector<128x1xf32> -> vector<128x1xf32>
    %41 = vector.broadcast %40 : vector<128x1xf32> to vector<128x256xf32>
    %42 = arith.mulf %37, %41 : vector<128x256xf32>
    %43 = arith.truncf %28 : vector<4x256xf32> to vector<4x256xbf16>
    %44 = arith.truncf %42 : vector<128x256xf32> to vector<128x256xbf16>
    %cst_28 = arith.constant dense<0.000000e+00> : vector<4x128xf32>
    %45 = tpu.matmul %43, %44, %cst_28 {dimension_numbers = #tpu.dot_dimension_numbers<[1], [1], [0], [0], [0, 0, 1, 0], [], []>} : vector<4x256xbf16>, vector<128x256xbf16>, vector<4x128xf32> -> vector<4x128xf32>
    %46 = vector.broadcast %11 : vector<1x128xf32> to vector<4x128xf32>
    %47 = arith.mulf %8, %46 : vector<4x128xf32>
    %cst_29 = arith.constant 1.000000e+00 : f32
    %48 = vector.broadcast %cst_29 : f32 to vector<1x128xf32>
    %49 = arith.subf %48, %11 : vector<1x128xf32>
    %50 = vector.broadcast %19 : f32 to vector<1x128xf32>
    %51 = arith.mulf %50, %49 : vector<1x128xf32>
    %52 = vector.broadcast %51 : vector<1x128xf32> to vector<4x128xf32>
    %53 = arith.mulf %52, %45 : vector<4x128xf32>
    %54 = arith.addf %47, %53 : vector<4x128xf32>
    %c0_30 = arith.constant 0 : index
    %c0_31 = arith.constant 0 : index
    %c0_32 = arith.constant 0 : index
    %55 = vector.load %arg12[%c0_30, %c0_31, %c0_32] : memref<1x4x128xf32, #tpu.memory_space<vmem>>, vector<1x4x128xf32>
    %56 = vector.shape_cast %55 : vector<1x4x128xf32> to vector<4x128xf32>
    %57 = vector.shape_cast %54 : vector<4x128xf32> to vector<1x4x128xf32>
    tpu.vector_store %arg12[%c0_30, %c0_31, %c0_32], %57 {strides = array<i32>} : memref<1x4x128xf32, #tpu.memory_space<vmem>>, vector<1x4x128xf32>,
    return
  }
  func.func @transform_0(%arg0: i32, %arg1: i32) -> (i32, i32, i32) {
    %c0_i32 = arith.constant 0 : i32
    %c0_i32_0 = arith.constant 0 : i32
    %c0_i32_1 = arith.constant 0 : i32
    return %arg0, %c0_i32, %c0_i32_0 : i32, i32, i32
  }
  func.func @transform_1(%arg0: i32, %arg1: i32) -> (i32, i32, i32) {
    %c0_i32 = arith.constant 0 : i32
    %c0_i32_0 = arith.constant 0 : i32
    %c0_i32_1 = arith.constant 0 : i32
    return %arg0, %c0_i32, %c0_i32_0 : i32, i32, i32
  }
  func.func @transform_2(%arg0: i32, %arg1: i32) -> (i32, i32, i32) {
    %c0_i32 = arith.constant 0 : i32
    %c0_i32_0 = arith.constant 0 : i32
    %c0_i32_1 = arith.constant 0 : i32
    return %arg0, %c0_i32, %c0_i32_0 : i32, i32, i32
  }
  func.func @transform_3(%arg0: i32, %arg1: i32) -> (i32, i32) {
    %c0_i32 = arith.constant 0 : i32
    %c0_i32_0 = arith.constant 0 : i32
    %c0_i32_1 = arith.constant 0 : i32
    return %c0_i32, %c0_i32_0 : i32, i32
  }
  func.func @transform_4(%arg0: i32, %arg1: i32) -> (i32, i32) {
    %c0_i32 = arith.constant 0 : i32
    %c0_i32_0 = arith.constant 0 : i32
    %c0_i32_1 = arith.constant 0 : i32
    return %c0_i32, %c0_i32_0 : i32, i32
  }
  func.func @transform_5(%arg0: i32, %arg1: i32) -> (i32, i32) {
    %c0_i32 = arith.constant 0 : i32
    %c0_i32_0 = arith.constant 0 : i32
    %c0_i32_1 = arith.constant 0 : i32
    return %c0_i32, %c0_i32_0 : i32, i32
  }
  func.func @transform_6(%arg0: i32, %arg1: i32) -> (i32, i32) {
    %c0_i32 = arith.constant 0 : i32
    %c0_i32_0 = arith.constant 0 : i32
    %c0_i32_1 = arith.constant 0 : i32
    return %c0_i32, %c0_i32_0 : i32, i32
  }
  func.func @transform_7(%arg0: i32, %arg1: i32) -> (i32, i32) {
    %c0_i32 = arith.constant 0 : i32
    %c0_i32_0 = arith.constant 0 : i32
    %c0_i32_1 = arith.constant 0 : i32
    return %c0_i32, %c0_i32_0 : i32, i32
  }
  func.func @transform_8(%arg0: i32, %arg1: i32) -> (i32, i32) {
    %c0_i32 = arith.constant 0 : i32
    %c0_i32_0 = arith.constant 0 : i32
    %c0_i32_1 = arith.constant 0 : i32
    return %c0_i32, %c0_i32_0 : i32, i32
  }
  func.func @transform_9(%arg0: i32, %arg1: i32) -> (i32, i32) {
    %c0_i32 = arith.constant 0 : i32
    %c0_i32_0 = arith.constant 0 : i32
    %c0_i32_1 = arith.constant 0 : i32
    return %c0_i32, %c0_i32_0 : i32, i32
  }
  func.func @transform_10(%arg0: i32, %arg1: i32) -> (i32, i32, i32) {
    %c0_i32 = arith.constant 0 : i32
    %c0_i32_0 = arith.constant 0 : i32
    return %arg0, %c0_i32, %arg1 : i32, i32, i32
  }
}

</mosaic_0001>

<bundles_post_ra>
// kernel: tpu_custom_call.1
= control target key start
LH: loop header
LB: loop body
LE: loop exit
PB: predicated region body
PF: predicated region fallthrough
CT: control target
= control target key end

     0   :  { %s2489_s0 = inlined_call_operand.vmem [shape: f32[2,4,256], index: 0, kind: input, shape index: {}]   ;;  %s2490_s1 = inlined_call_operand.hbm [shape: f32[2,4,256], index: 1, kind: input, shape index: {}]   ;;  %s2491_s2 = inlined_call_operand.vmem [shape: f32[2,1,256], index: 2, kind: input, shape index: {}]   ;;  %s2492_s3 = inlined_call_operand.hbm [shape: f32[4,4], index: 3, kind: input, shape index: {}]   ;;  %s2493_s4 = inlined_call_operand.vmem [shape: f32[4,1], index: 4, kind: input, shape index: {}]   ;;  %s2494_s5 = inlined_call_operand.vmem [shape: f32[4,4], index: 5, kind: input, shape index: {}]   ;;  %s2495_s6 = inlined_call_operand.vmem [shape: f32[4,1], index: 6, kind: input, shape index: {}]   ;;  %s2496_s7 = inlined_call_operand.vmem [shape: f32[4,4], index: 7, kind: input, shape index: {}]   ;;  %s2497_s8 = inlined_call_operand.vmem [shape: f32[4,1], index: 8, kind: input, shape index: {}]   ;;  %s2498_s9 = inlined_call_operand.<no memory space> [shape: f32[1,1], index: 9, kind: input, shape index: {}]   ;;  %s2499_s10 = inlined_call_operand.hbm [shape: f32[2,4,256], index: 10, kind: output, shape index: {}]  }
   0x1   :  { %2510 = sst [smem:[#allocation19_spill]] %s2491_s2  ;;  %v15_v0 = vstv %s2498_s9 }
   0x2   :  { %2511 = sst [smem:[#allocation20_spill]] %s2492_s3  ;;  %16 = vst [vmem:[#allocation2] sm:$0x1] %v15_v0 }
   0x3   :  { %2512 = sst [smem:[#allocation21_spill]] %s2495_s6 }
   0x4   :  { %2513 = sst [smem:[#allocation22_spill]] %s2496_s7 }
   0x5   :  { %2514 = sst [smem:[#allocation23_spill]] %s2497_s8 }
   0x6   :  { %2515 = sst [smem:[#allocation24_spill]] %s2499_s10 }
   0x7   :  { %17 = vsyncpa [#allocation4], 0 }
   0x8   :  { %19 = vsyncpa [#allocation4 + $0x1], 0 }
   0x9   :  { %20 = vsyncpa [#allocation7], 0 }
   0xa   :  { %21 = vsyncpa [#allocation5], 0 }
   0xb   :  { %23 = vsyncpa [#allocation5 + $0x1], 0  ;;  %s1933_s15 = smov 0   ;;  %s1935_s16 = smov 0  }
   0xc   :  { %s1937_s17 = smov 0   ;;  %s1939_s18 = smov 0  }
   0xd   :  { %s1941_s19 = smov 0   ;;  %s1943_s20 = smov 0  }
   0xe   :  { %s1945_s21 = smov 0   ;;  %s1947_s9 = smov 0  }
   0xf   :  { %s1949_s22 = smov 0   ;;  %s1951_s23 = smov 0  }
  0x10   :  { %s1953_s24 = smov 0  }
  0x11 LB: > { %2516 = sst [smem:[#allocation12_spill]] %s1827_s15  ;;  %s1415_s25 = sadd.s32 4294967295, %s1867_s24   ;;  %s1867_s24 = sphi %s1953_s24, %s29_s24   ;;  %s1863_s23 = sphi %s1951_s23, %s2554_s23   ;;  %s1859_s22 = sphi %s1949_s22, %s2553_s22   ;;  %s1855_s9 = sphi %s1947_s9, %s2552_s9   ;;  %s1851_s21 = sphi %s1945_s21, %s2544_s21   ;;  %s1847_s20 = sphi %s1943_s20, %s2551_s20   ;;  %s1843_s19 = sphi %s1941_s19, %s2550_s19   ;;  %s1839_s18 = sphi %s1939_s18, %s2549_s18   ;;  %s1835_s17 = sphi %s1937_s17, %s2548_s17   ;;  %s1831_s16 = sphi %s1935_s16, %s2547_s16   ;;  %s1827_s15 = sphi %s1933_s15, %s2543_s15  }
  0x12   : > { %2517 = sst [smem:[#allocation13_spill]] %s1831_s16  ;;  %s1416_s26 = sadd.s32 4294967294, %s1867_s24  }
  0x13   : > { %2518 = sst [smem:[#allocation14_spill]] %s1859_s22  ;;  %p87_p0 = scmp.ne.s32.totalorder %s1843_s19, %s1839_s18 }
  0x14   : > { %p1989_p1 = scmp.eq.s32.totalorder %s1415_s25, 0  ;;  %p285_p2 = scmp.ne.s32.totalorder %s1835_s17, %s1831_s16 }
  0x15   : > { %p286_p4 = scmp.eq.s32.totalorder %s1415_s25, 3  ;;  %p291_p5 = scmp.ne.s32.totalorder %s1831_s16, %s1827_s15 }
  0x16   : > { %p1998_p3 = por %p1989_p1, %p87_p0  ;;  %p292_p6 = scmp.eq.s32.totalorder %s1416_s26, 3 }
  0x17   : > { %p2004_p7 = por %p286_p4, %p285_p2  ;;  %p1417_p8 = scmp.ge.s32.totalorder %s1867_s24, 1 }
  0x18   : > { %p2009_p9 = por %p292_p6, %p291_p5  ;;  %p299_p10 = scmp.lt.s32.totalorder %s1867_s24, 5 }
  0x19   : > { %s2521_s30 = scalar_select %p2004_p7, 1, 0 }
  0x1a   : > { %s2523_s11 = scalar_select %p2009_p9, 1, 0 }
  0x1b   : > { %2522 = sst [smem:[#allocation15_spill]] %s2521_s30  ;;  %p2014_p11 = pnand %p1417_p8, %p299_p10 }
  0x1c   : > { %2524 = sst [smem:[#allocation16_spill]] %s2523_s11  ;;  %s1869_s13 = smov [#allocation6]  }
  0x1d   : > { %s312_s14 = sshll.u32 %s1869_s13, 4  ;;  %p1482_p12 = pneg %p2014_p11  ;;  %s313_s14 = int_to_ptr.vmem [resolvable:$true] %s312_s14 }
  0x1e   : > { %s38_s18 = sadd.s32 1, %s1859_s22  ;;  %s1700_s25 = scalar_lea.vmem %s313_s14, 64 }
  0x1f   : > { %p1483_p13 = pnand %p1482_p12, %p1989_p1  ;;  %p1701_p2 = scmp.ne.s32.totalorder %s313_s14, %s1700_s25 }
  0x20   : > { %p1708_p6 = scmp.lt.s32.totalorder %s313_s14, %s313_s14  ;;  %p1709_p9 = scmp.lt.s32.totalorder %s1700_s25, %s1700_s25 }
  0x21   : > { %p1691_p0 = pneg %p1483_p13 }
  0x22   : > { %p1710_p8 = por %p1709_p9, %p1708_p6 }
  0x23   : > { %p1703_p4 = pnand %p1701_p2, %p1691_p0 }
  0x25   : > { %p1704_p5 = pneg %p1703_p4 }
  0x27   : > { %p1711_p10 = pnand %p1710_p8, %p1704_p5 }
  0x29   : > { %1714 = shalt.err (!%p1711_p10)
}
  0x2a   : > { %s2526_s3 = sld [smem:[#allocation20_spill]]  ;;  %p39_p12 = scmp.ge.s32.totalorder %s38_s18, 2 }
  0x2b   : > { %s41_s13 = sadd.s32 1, %s1863_s23  ;;  %s74_s25 = sadd.s32 1, %s1847_s20 }
  0x2c   : > { %p81_p9 = scmp.ne.s32.totalorder %s1847_s20, %s1843_s19  ;;  %s2556_s18 = smov (%p39_p12, %s38_s18), 0 }
  0x2d   : > { %2527 = sst [smem:[#allocation17_spill]] %s2556_s18  ;;  %s2558_s13 = smov (!%p39_p12, %s41_s13), %s1863_s23 }
  0x2e   : > { %p82_p0 = scmp.eq.s32.totalorder %s1867_s24, 0  ;;  %s271_s28 = ssub.s32 %s1859_s22, %s2556_s18 }
  0x2f   : > { %p43_p2 = scmp.ge.s32.totalorder %s2558_s13, 2  ;;  %p1495_p4 = scmp.lt.s32.totalorder %s1867_s24, 4 }
  0x30   : > { %1485 = dma.hbm_to_vmem [thread:$0]  (!%p1483_p13), %s2526_s3, 64, %s313_s14, [#allocation7]  }
  0x31   : > { %p2037_p5 = por %p82_p0, %p81_p9  ;;  %s349_s14 = sand.u32 1, %s1847_s20  }
  0x32   : > { %s2560_s13 = smov (%p43_p2, %s2558_s13), 0  ;;  %s1420_s3 = sshll.u32 %s349_s14, 3 }
  0x33   : > { %2529 = sst [smem:[#allocation18_spill]] %s2560_s13  ;;  %s71_s11 = ssub.s32 %s1863_s23, %s2560_s13 }
  0x34   : > { %p72_p13 = scmp.eq.s32.totalorder %s71_s11, 0  ;;  %s272_s15 = sor.u32 %s271_s28, %s71_s11 }
  0x35   : > { %p273_p6 = scmp.eq.s32.totalorder %s272_s15, 0  ;;  %s1463_s10 = sshll.u32 %s1863_s23, 7 }
  0x36   : > { %s2048_s30 = scalar_select %p72_p13, %s1847_s20, %s74_s25  }
  0x37   : > { %s2530_s18 = sadd.s32 1, %s1835_s17  ;;  %s359_s7 = scalar_lea.hbm %s2490_s1, %s1463_s10 }
  0x38   : > { %s2053_s22 = scalar_select %p273_p6, %s1835_s17, %s2530_s18  }
  0x39   : > { %s353_s2 = scalar_lea.vmem [#allocation3], %s1420_s3  ;;  %p2062_p8 = pnand %p1495_p4, %p2037_p5 }
  0x3a   : > { %s361_s6 = sshll.u32 %s353_s2, 4  ;;  %s350_s15 = scalar_lea.sflag [#allocation4], %s349_s14  ;;  %s362_s6 = int_to_ptr.vmem [resolvable:$true] %s361_s6 }
  0x3b   : > { %p1717_p10 = pneg %p2062_p8  ;;  %s1728_s11 = scalar_lea.vmem %s362_s6, 128 }
  0x3c   : > { %p1729_p12 = scmp.ne.s32.totalorder %s362_s6, %s1728_s11  ;;  %s1870_s18 = smov [#allocation3]  }
  0x3d   : > { %s1733_s8 = sshll.u32 %s1870_s18, 4  ;;  %s1734_s8 = int_to_ptr.vmem [resolvable:$false] %s1733_s8 }
  0x3e   : > { %p1731_p9 = pnand %p1729_p12, %p1717_p10  ;;  %s1735_s3 = scalar_lea.vmem %s1734_s8, 256 }
  0x3f   : > { %p1736_p2 = scmp.lt.s32.totalorder %s362_s6, %s1734_s8  ;;  %p1737_p13 = scmp.lt.s32.totalorder %s1735_s3, %s1728_s11 }
  0x40   : > { %p1732_p0 = pneg %p1731_p9 }
  0x41   : > { %p1738_p6 = por %p1737_p13, %p1736_p2 }
  0x43   : > { %p1739_p7 = pnand %p1738_p6, %p1732_p0 }
  0x45   : > { %1742 = shalt.err (!%p1739_p7)
}
  0x46   : > { %1489 = dma.hbm_to_vmem [thread:$0]  (!%p2062_p8), %s359_s7, 128, %s362_s6, %s350_s15  }
  0x47   : > { %377 = sbr.rel (%p2014_p11) target bundleno = 1257 (0x4e9), region = 60  ;;  %s379_s2 = sand.u32 (!%p2014_p11), 1, %s1843_s19  }
  0x48   : > { %s1424_s10 = sshll.u32 (!%p2014_p11), %s379_s2, 3  ;;  %s380_s16 = scalar_lea.sflag (!%p2014_p11), [#allocation4], %s379_s2 }
  0x49   : > { %s383_s25 = scalar_lea.vmem (!%p2014_p11), [#allocation3], %s1424_s10 }
  0x4c   : > { %1814 = dma.done.wait (%p1998_p3), %s380_s16, 128  }
  0x4d   : > { %1816 = vsyncadd (%p1998_p3), %s380_s16, 4294967168 }
  0x4e   : > { %1818 = dma.done.wait (%p1989_p1), [#allocation7], 64  }
  0x4f   : > { %1820 = vsyncadd (%p1989_p1), [#allocation7], 4294967232  ;;  %p433_p7 = scmp.lt.s32.totalorder %s1855_s9, 1  ;;  %s1430_s6 = sshll.u32 %s1851_s21, 7  ;;  %v1871_v1 = vmov 0.0   ;;  %vm1872_vm0 = vmmov 0   ;;  %v715_v10 = vlaneseq }
  0x50   : > { %1467 = vmatprep.subr.mxu1 %v1871_v1  ;;  %s2084_s7 = sshra.s32 %s1430_s6, 7  ;;  %707 = vmatprep.mubr.f32.mxu0 %v1871_v1  ;;  %v1873_v2 = vmov 0   ;;  %vm470_vm1 = vcmask 1043456   ;;  %vm466_vm2 = vcmask 31744   ;;  %v453_v4 = vld [vmem:[#allocation6] sm:$0xf] }
  0x51   : > { %s2088_s29 = scalar_select %p433_p7, %s1855_s9, 1  ;;  %1469 = vmatprep.mubr.msk.f32.mxu1 %vm1872_vm0, %v1871_v1  ;;  %1590 = vset.pattern.permute.xlu0 %v1873_v2  ;;  %v445_v5 = vld [vmem:[%s383_s25] sm:$0xff]  ;;  %v2122_v11 = vshrl.u32 %v715_v10, 7 }
  0x52   : > { %s1431_s27 = sshll.u32 %s2084_s7, 2  ;;  %v550_v6 = vcombine.high %v445_v5, %v445_v5  ;;  %v456_v7 = vld [vmem:[%s2493_s4] sm:$0xf]  ;;  %s2532_s10 = sld [smem:[#allocation21_spill]] }
  0x53   : > { %s1464_s12 = sshll.u32 %s2088_s29, 3  ;;  %463 = vperm.xlu0 %1590, %v456_v7   ;;  %v454_v8 = vld [vmem:[%s2494_s5] sm:$0xf]  ;;  %s1429_s16 = sshll.u32 %s2088_s29, 1  ;;  %v717_v12 = vsub.s32 0, %v2122_v11 }
  0x54   : > { %s2096_s26 = scalar_lea.vmem %s2489_s0, %s1464_s12  ;;  %s2534_s28 = sld [smem:[#allocation22_spill]] }
  0x55   : > { %s449_s14 = scalar_lea.vmem %s2096_s26, %s1431_s27  ;;  %s2533_s27 = sld [smem:[#allocation19_spill]] }
  0x56   : > { %v2099_v3 = vld [vmem:[%s449_s14] sm:$0xf]  ;;  %s2535_s15 = sld [smem:[#allocation23_spill]]  ;;  %s1459_s2 = sshll.u32 %s1855_s9, 1 }
  0x57   : > { %1468 = vmatpush3.msk.msra.mxu1 %vm470_vm1, %v2099_v3  ;;  %s2536_s11 = sld [smem:[#allocation13_spill]] }
  0x58   : > { %1470 = vmatmul.mubr.msk.f32.vlgmr.msra.gmra.mxu1 %vm466_vm2, %v453_v4  ;;  %1434 = vmatprep.subr.msk.mxu1 %vm470_vm1, %v550_v6  ;;  %v457_v9 = vld [vmem:[%s2532_s10] sm:$0xf]  ;;  %s1291_s10 = sadd.s32 %s1851_s21, %s1459_s2 }
  0x59   : > { %622 = vmatprep.mubr.f32.mxu1 %v1871_v1  ;;  %1435 = vmatpush1.msk.msra.mxu1 %vm470_vm1, %v445_v5  ;;  %s1460_s25 = sshll.u32 %s1291_s10, 6 }
  0x5a   : > { %546 = vperm.xlu0 %1590, %v457_v9  }
  0x5b   : > { %s441_s12 = scalar_lea.vmem %s2533_s27, %s1429_s16  ;;  %s2537_s16 = sld [smem:[#allocation15_spill]] }
  0x5c   : > { %1436 = vmatmul.mubr.msk.f32.vlgmr.msra.gmra.mxu1 %vm466_vm2, %v454_v8  ;;  %s451_s13 = scalar_lea.vmem %s441_s12, %s2084_s7  ;;  %s2538_s7 = sld [smem:[#allocation24_spill]] }
  0x5d   : > { %871 = vmatprep.mubr.f32.mxu1 %v1871_v1  ;;  %v2126_v13 = vld [vmem:[%s451_s13] sm:$0x1]  ;;  %s430_s8 = sand.u32 1, %s2536_s11  }
  0x5e   : > { %v2131_v14 = vrot.slane %v2126_v13, %v717_v12  ;;  %s1426_s3 = sshll.u32 %s430_s8, 2  ;;  %s1280_s21 = scalar_lea.sflag [#allocation5], %s430_s8 }
  0x5f   : > { %s432_s6 = scalar_lea.vmem [#allocation8], %s1426_s3 }
  0x60   : > { %s1295_s27 = sshll.u32 %s432_s6, 4  ;;  %s2430_s27 = int_to_ptr.vmem [resolvable:$true] %s1295_s27 }
  0x61   : > { %s1743_s9 = scalar_lea.vmem %s2430_s27, 64  ;;  %p2539_p3 = scmp.ne.s32.totalorder %s2537_s16, 0 }
  0x62   : > { %s2428_s29 = scalar_lea.hbm %s2538_s7, %s1460_s25  ;;  %p1744_p1 = scmp.ne.s32.totalorder %s2430_s27, %s1743_s9 }
  0x64   : > { %p1745_p11 = pnand %p1744_p1, %p2539_p3 }
  0x66   : > { %p1746_p4 = pneg %p1745_p11 }
  0xce   : > { %v464_v15 = vpop.permute.xlu0 %463 }
  0xd5   : > { %v547_v21 = vpop.permute.xlu0 %546 }
 0x118   : > { %v540_v16 = vpop.f32.mrf.mxu1 }
 0x119   : > { %v541_v17 = vadd.f32 %v540_v16, %v464_v15 }
 0x11a   : > { %v1471_v18 = vpop.f32.mrf.mxu1 }
 0x11b   : > { %v720_v19 = vmul.f32 %v2131_v14, %v541_v17 }
 0x11c   : > { %v624_v20 = vpop.f32.mrf.mxu1 }
 0x11d   : > { %721 = vxpose.xlu1.b32.start.end [1/1] (short) %v720_v19, 128  ;;  %v625_v24 = vadd.f32 %v624_v20, %v547_v21 }
 0x11e   : > { %v626_v22 = vpop.f32.mrf.mxu1 }
 0x11f   : > { %v627_v23 = vadd.f32 %v626_v22, %v547_v21 }
 0x121   : > { %1440 = vmatprep.subr.msk.mxu1 %vm470_vm1, %v627_v23  ;;  %v444_v23 = vld [vmem:[%s2096_s26] sm:$0xff] }
 0x122   : > { %1441 = vmatpush1.msk.msra.mxu1 %vm470_vm1, %v625_v24 }
 0x199   : > { %v737_v25 = vpop.trf.xlu1 }
 0x19a   : > { %1442 = vmatmul.mubr.msk.f32.vlgmr.msra.gmra.mxu1 %vm466_vm2, %v737_v25  ;;  %v635_v25 = vcombine.high %v444_v23, %v444_v23 }
 0x19b   : > { %877 = vmatprep.mubr.f32.mxu1 %v1871_v1 }
 0x19c   : > { %1437 = vmatprep.subr.msk.mxu0 %vm470_vm1, %v635_v25 }
 0x19d   : > { %v738_v26 = vpop.trf.xlu1  ;;  %1438 = vmatpush1.msk.msra.mxu0 %vm470_vm1, %v444_v23 }
 0x19e   : > { %1443 = vmatmul.mubr.msk.f32.gmra.mxu1 %vm466_vm2, %v738_v26  ;;  %v455_v26 = vld [vmem:[%s2534_s28] sm:$0xf]  ;;  %s1874_s28 = smov [#allocation8]  }
 0x19f   : > { %883 = vmatprep.mubr.f32.mxu1 %v1871_v1  ;;  %1439 = vmatmul.mubr.msk.f32.vlgmr.msra.gmra.mxu0 %vm466_vm2, %v455_v26  ;;  %s1747_s26 = sshll.u32 %s1874_s28, 4  ;;  %s1748_s26 = int_to_ptr.vmem [resolvable:$false] %s1747_s26 }
 0x1a0   : > { %s1749_s14 = scalar_lea.vmem %s1748_s26, 128  ;;  %p1750_p5 = scmp.lt.s32.totalorder %s2430_s27, %s1748_s26 }
 0x1a1   : > { %v739_v27 = vpop.trf.xlu1  ;;  %p1751_p8 = scmp.lt.s32.totalorder %s1749_s14, %s1743_s9 }
 0x1a2   : > { %1444 = vmatmul.mubr.msk.f32.gmra.mxu1 %vm466_vm2, %v739_v27 }
 0x1a3   : > { %889 = vmatprep.mubr.f32.mxu1 %v1871_v1  ;;  %p1752_p10 = por %p1751_p8, %p1750_p5 }
 0x1a5   : > { %v740_v28 = vpop.trf.xlu1  ;;  %p1753_p12 = pnand %p1752_p10, %p1746_p4 }
 0x1a6   : > { %1445 = vmatmul.mubr.msk.f32.gmra.mxu1 %vm466_vm2, %v740_v28 }
 0x1a7   : > { %895 = vmatprep.mubr.f32.mxu1 %v1871_v1 }
 0x1a9   : > { %v741_v29 = vpop.trf.xlu1 }
 0x1aa   : > { %1446 = vmatmul.mubr.msk.f32.gmra.mxu1 %vm466_vm2, %v741_v29 }
 0x1ab   : > { %901 = vmatprep.mubr.f32.mxu1 %v1871_v1 }
 0x1ad   : > { %v742_v30 = vpop.trf.xlu1 }
 0x1ae   : > { %1447 = vmatmul.mubr.msk.f32.gmra.mxu1 %vm466_vm2, %v742_v30 }
 0x1af   : > { %907 = vmatprep.mubr.f32.mxu1 %v1871_v1 }
 0x1b1   : > { %v743_v31 = vpop.trf.xlu1 }
 0x1b2   : > { %1448 = vmatmul.mubr.msk.f32.gmra.mxu1 %vm466_vm2, %v743_v31 }
 0x1b3   : > { %913 = vmatprep.mubr.f32.mxu1 %v1871_v1 }
 0x1b5   : > { %v744_v32 = vpop.trf.xlu1 }
 0x1b6   : > { %1449 = vmatmul.mubr.msk.f32.gmra.mxu1 %vm466_vm2, %v744_v32 }
 0x1b7   : > { %919 = vmatprep.mubr.f32.mxu1 %v1871_v1 }
 0x1b9   : > { %v745_v33 = vpop.trf.xlu1 }
 0x1ba   : > { %1450 = vmatmul.mubr.msk.f32.gmra.mxu1 %vm466_vm2, %v745_v33 }
 0x1bb   : > { %925 = vmatprep.mubr.f32.mxu1 %v1871_v1 }
 0x1bd   : > { %v746_v34 = vpop.trf.xlu1 }
 0x1be   : > { %1451 = vmatmul.mubr.msk.f32.gmra.mxu1 %vm466_vm2, %v746_v34 }
 0x1bf   : > { %931 = vmatprep.mubr.f32.mxu1 %v1871_v1 }
 0x1c1   : > { %v747_v35 = vpop.trf.xlu1 }
 0x1c2   : > { %1452 = vmatmul.mubr.msk.f32.gmra.mxu1 %vm466_vm2, %v747_v35 }
 0x1c3   : > { %937 = vmatprep.mubr.f32.mxu1 %v1871_v1 }
 0x1c5   : > { %v748_v36 = vpop.trf.xlu1 }
 0x1c6   : > { %1453 = vmatmul.mubr.msk.f32.gmra.mxu1 %vm466_vm2, %v748_v36 }
 0x1c7   : > { %943 = vmatprep.mubr.f32.mxu1 %v1871_v1 }
 0x1c9   : > { %v749_v37 = vpop.trf.xlu1 }
 0x1ca   : > { %1454 = vmatmul.mubr.msk.f32.gmra.mxu1 %vm466_vm2, %v749_v37 }
 0x1cb   : > { %949 = vmatprep.mubr.f32.mxu1 %v1871_v1 }
 0x1cd   : > { %v750_v38 = vpop.trf.xlu1 }
 0x1ce   : > { %1455 = vmatmul.mubr.msk.f32.gmra.mxu1 %vm466_vm2, %v750_v38 }
 0x1cf   : > { %955 = vmatprep.mubr.f32.mxu1 %v1871_v1 }
 0x1d1   : > { %v751_v39 = vpop.trf.xlu1 }
 0x1d2   : > { %1456 = vmatmul.mubr.msk.f32.gmra.mxu1 %vm466_vm2, %v751_v39 }
 0x1d3   : > { %961 = vmatprep.mubr.f32.mxu1 %v1871_v1 }
 0x1d5   : > { %v752_v40 = vpop.trf.xlu1 }
 0x1d6   : > { %1457 = vmatmul.mubr.msk.f32.gmra.mxu1 %vm466_vm2, %v752_v40 }
 0x25a   : > { %v2167_v41 = vpop.f32.mrf.mxu1 }
 0x25c   : > { %v2169_v42 = vpop.f32.mrf.mxu1 }
 0x25d   : > { %v968_v31 = vmax.f32 %v2167_v41, %v2169_v42 }
 0x25e   : > { %v2171_v43 = vpop.f32.mrf.mxu1 }
 0x260   : > { %v2173_v44 = vpop.f32.mrf.mxu1 }
 0x261   : > { %v971_v32 = vmax.f32 %v2171_v43, %v2173_v44 }
 0x262   : > { %v2175_v45 = vpop.f32.mrf.mxu1 }
 0x264   : > { %v2177_v46 = vpop.f32.mrf.mxu1 }
 0x265   : > { %v974_v29 = vmax.f32 %v2175_v45, %v2177_v46 }
 0x266   : > { %v2179_v47 = vpop.f32.mrf.mxu1 }
 0x268   : > { %v2181_v48 = vpop.f32.mrf.mxu1 }
 0x269   : > { %v977_v30 = vmax.f32 %v2179_v47, %v2181_v48 }
 0x26a   : > { %v2183_v49 = vpop.f32.mrf.mxu1 }
 0x26c   : > { %v2185_v50 = vpop.f32.mrf.mxu1 }
 0x26d   : > { %v980_v27 = vmax.f32 %v2183_v49, %v2185_v50 }
 0x26e   : > { %v2187_v51 = vpop.f32.mrf.mxu1 }
 0x270   : > { %v2189_v52 = vpop.f32.mrf.mxu1 }
 0x271   : > { %v983_v28 = vmax.f32 %v2187_v51, %v2189_v52 }
 0x272   : > { %v2191_v53 = vpop.f32.mrf.mxu1 }
 0x274   : > { %v2193_v54 = vpop.f32.mrf.mxu1 }
 0x275   : > { %v986_v22 = vmax.f32 %v2191_v53, %v2193_v54 }
 0x276   : > { %v2195_v55 = vpop.f32.mrf.mxu1 }
 0x278   : > { %v2197_v56 = vpop.f32.mrf.mxu1 }
 0x279   : > { %v989_v24 = vmax.f32 %v2195_v55, %v2197_v56 }
 0x27a   : > { %v2199_v57 = vpop.f32.mrf.mxu1 }
 0x27c   : > { %v2201_v58 = vpop.f32.mrf.mxu1 }
 0x27d   : > { %v992_v20 = vmax.f32 %v2199_v57, %v2201_v58 }
 0x27e   : > { %v2203_v59 = vpop.f32.mrf.mxu1 }
 0x280   : > { %v2205_v60 = vpop.f32.mrf.mxu1 }
 0x281   : > { %v995_v21 = vmax.f32 %v2203_v59, %v2205_v60 }
 0x282   : > { %v2207_v61 = vpop.f32.mrf.mxu1 }
 0x284   : > { %v2209_v62 = vpop.f32.mrf.mxu1 }
 0x285   : > { %v998_v18 = vmax.f32 %v2207_v61, %v2209_v62 }
 0x286   : > { %v2211_v63 = vpop.f32.mrf.mxu1 }
 0x288   : > { %v2213_v0 = vpop.f32.mrf.mxu1 }
 0x289   : > { %v1001_v19 = vmax.f32 %v2211_v63, %v2213_v0 }
 0x28a   : > { %v2215_v1 = vpop.f32.mrf.mxu1 }
 0x28c   : > { %v2217_v2 = vpop.f32.mrf.mxu1 }
 0x28d   : > { %v1004_v16 = vmax.f32 %v2215_v1, %v2217_v2 }
 0x28e   : > { %v2219_v4 = vpop.f32.mrf.mxu1 }
 0x290   : > { %v2221_v5 = vpop.f32.mrf.mxu1 }
 0x291   : > { %v1007_v17 = vmax.f32 %v2219_v4, %v2221_v5 }
 0x292   : > { %v957_v6 = vpop.f32.mrf.mxu1 }
 0x294   : > { %v959_v7 = vpop.f32.mrf.mxu1 }
 0x295   : > { %v1010_v8 = vmax.f32 %v957_v6, %v959_v7 }
 0x296   : > { %v963_v9 = vpop.f32.mrf.mxu1 }
 0x297   : > { %1011 = vmax.xlane.f32.xlu1 %v1010_v8 }
 0x298   : > { %v965_v10 = vpop.f32.mrf.mxu1 }
 0x299   : > { %v1013_v15 = vmax.f32 %v963_v9, %v965_v10 }
 0x29b   : > { %1014 = vmax.xlane.f32.xlu0 %v1013_v15 }
 0x29f   : > { %1005 = vmax.xlane.f32.xlu0 %v1004_v16 }
 0x2a3   : > { %1008 = vmax.xlane.f32.xlu0 %v1007_v17 }
 0x2a7   : > { %999 = vmax.xlane.f32.xlu0 %v998_v18 }
 0x2ab   : > { %1002 = vmax.xlane.f32.xlu0 %v1001_v19 }
 0x2af   : > { %993 = vmax.xlane.f32.xlu0 %v992_v20 }
 0x2b3   : > { %996 = vmax.xlane.f32.xlu0 %v995_v21 }
 0x2b7   : > { %987 = vmax.xlane.f32.xlu0 %v986_v22 }
 0x2bb   : > { %990 = vmax.xlane.f32.xlu0 %v989_v24 }
 0x2bf   : > { %981 = vmax.xlane.f32.xlu0 %v980_v27 }
 0x2c3   : > { %984 = vmax.xlane.f32.xlu0 %v983_v28 }
 0x2c7   : > { %975 = vmax.xlane.f32.xlu0 %v974_v29 }
 0x2cb   : > { %978 = vmax.xlane.f32.xlu0 %v977_v30 }
 0x2cf   : > { %969 = vmax.xlane.f32.xlu0 %v968_v31 }
 0x2d3   : > { %972 = vmax.xlane.f32.xlu0 %v971_v32 }
 0x320   : > { %v1012_v33 = vpop.xlane.xlu1 %1011 }
 0x321   : > { %v1044_v34 = vsub.f32 %v957_v6, %v1012_v33  ;;  %v1045_v35 = vsub.f32 %v959_v7, %v1012_v33 }
 0x323   : > { %v1104_v36 = vmul.f32 1.442695, %v1044_v34  ;;  %v1106_v37 = vmul.f32 1.442695, %v1045_v35 }
 0x324   : > { %v1015_v38 = vpop.xlane.xlu0 %1014 }
 0x325   : > { %1593 = vpow2.f32 %v1104_v36  ;;  %v1046_v39 = vsub.f32 %v963_v9, %v1015_v38  ;;  %v1047_v40 = vsub.f32 %v965_v10, %v1015_v38 }
 0x326   : > { %1595 = vpow2.f32 %v1106_v37 }
 0x327   : > { %v1108_v8 = vmul.f32 1.442695, %v1046_v39  ;;  %v1110_v15 = vmul.f32 1.442695, %v1047_v40 }
 0x328   : > { %v1006_v16 = vpop.xlane.xlu0 %1005 }
 0x329   : > { %1597 = vpow2.f32 %v1108_v8  ;;  %v1040_v17 = vsub.f32 %v2215_v1, %v1006_v16  ;;  %v1041_v18 = vsub.f32 %v2217_v2, %v1006_v16 }
 0x32a   : > { %1599 = vpow2.f32 %v1110_v15 }
 0x32b   : > { %v1096_v19 = vmul.f32 1.442695, %v1040_v17  ;;  %v1098_v20 = vmul.f32 1.442695, %v1041_v18 }
 0x32c   : > { %v1009_v6 = vpop.xlane.xlu0 %1008 }
 0x32d   : > { %1601 = vpow2.f32 %v1096_v19  ;;  %v1042_v7 = vsub.f32 %v2219_v4, %v1009_v6  ;;  %v1043_v21 = vsub.f32 %v2221_v5, %v1009_v6 }
 0x32e   : > { %1603 = vpow2.f32 %v1098_v20 }
 0x32f   : > { %v1100_v9 = vmul.f32 1.442695, %v1042_v7  ;;  %v1102_v10 = vmul.f32 1.442695, %v1043_v21 }
 0x330   : > { %v1000_v22 = vpop.xlane.xlu0 %999 }
 0x331   : > { %1605 = vpow2.f32 %v1100_v9  ;;  %v1036_v23 = vsub.f32 %v2207_v61, %v1000_v22  ;;  %v1037_v1 = vsub.f32 %v2209_v62, %v1000_v22 }
 0x332   : > { %v2264_v24 = vpop.eup %1593  ;;  %1607 = vpow2.f32 %v1102_v10 }
 0x333   : > { %v2266_v2 = vpop.eup %1595  ;;  %v1088_v25 = vmul.f32 1.442695, %v1036_v23  ;;  %v1090_v26 = vmul.f32 1.442695, %v1037_v1 }
 0x334   : > { %v1003_v27 = vpop.xlane.xlu0 %1002  ;;  %v1154_v4 = vadd.f32 %v2266_v2, %v2264_v24 }
 0x335   : > { %1609 = vpow2.f32 %v1088_v25  ;;  %v1038_v5 = vsub.f32 %v2211_v63, %v1003_v27  ;;  %v1039_v28 = vsub.f32 %v2213_v0, %v1003_v27 }
 0x336   : > { %v2272_v29 = vpop.eup %1597  ;;  %1611 = vpow2.f32 %v1090_v26  ;;  %1155 = vadd.xlane.f32.xlu0 %v1154_v4 }
 0x337   : > { %v2274_v61 = vpop.eup %1599  ;;  %v1092_v62 = vmul.f32 1.442695, %v1038_v5  ;;  %v1094_v30 = vmul.f32 1.442695, %v1039_v28 }
 0x338   : > { %v994_v31 = vpop.xlane.xlu0 %993  ;;  %v1157_v32 = vadd.f32 %v2274_v61, %v2272_v29 }
 0x339   : > { %1613 = vpow2.f32 %v1092_v62  ;;  %v1032_v33 = vsub.f32 %v2199_v57, %v994_v31  ;;  %v1033_v34 = vsub.f32 %v2201_v58, %v994_v31 }
 0x33a   : > { %v2280_v63 = vpop.eup %1601  ;;  %1615 = vpow2.f32 %v1094_v30  ;;  %1158 = vadd.xlane.f32.xlu0 %v1157_v32 }
 0x33b   : > { %v2282_v0 = vpop.eup %1603  ;;  %v1080_v35 = vmul.f32 1.442695, %v1032_v33  ;;  %v1082_v36 = vmul.f32 1.442695, %v1033_v34 }
 0x33c   : > { %v997_v37 = vpop.xlane.xlu0 %996  ;;  %v1148_v38 = vadd.f32 %v2282_v0, %v2280_v63 }
 0x33d   : > { %1617 = vpow2.f32 %v1080_v35  ;;  %v1034_v39 = vsub.f32 %v2203_v59, %v997_v37  ;;  %v1035_v40 = vsub.f32 %v2205_v60, %v997_v37 }
 0x33e   : > { %v2288_v57 = vpop.eup %1605  ;;  %1619 = vpow2.f32 %v1082_v36  ;;  %1149 = vadd.xlane.f32.xlu0 %v1148_v38 }
 0x33f   : > { %v2290_v58 = vpop.eup %1607  ;;  %v1084_v8 = vmul.f32 1.442695, %v1034_v39  ;;  %v1086_v15 = vmul.f32 1.442695, %v1035_v40 }
 0x340   : > { %v988_v16 = vpop.xlane.xlu0 %987  ;;  %v1151_v17 = vadd.f32 %v2290_v58, %v2288_v57 }
 0x341   : > { %1621 = vpow2.f32 %v1084_v8  ;;  %v1028_v18 = vsub.f32 %v2191_v53, %v988_v16  ;;  %v1029_v19 = vsub.f32 %v2193_v54, %v988_v16 }
 0x342   : > { %v2296_v59 = vpop.eup %1609  ;;  %1623 = vpow2.f32 %v1086_v15  ;;  %1152 = vadd.xlane.f32.xlu1 %v1151_v17 }
 0x343   : > { %v2298_v60 = vpop.eup %1611  ;;  %v1072_v20 = vmul.f32 1.442695, %v1028_v18  ;;  %v1074_v6 = vmul.f32 1.442695, %v1029_v19 }
 0x344   : > { %v991_v7 = vpop.xlane.xlu0 %990  ;;  %v1142_v21 = vadd.f32 %v2298_v60, %v2296_v59 }
 0x345   : > { %1625 = vpow2.f32 %v1072_v20  ;;  %v1030_v9 = vsub.f32 %v2195_v55, %v991_v7  ;;  %v1031_v10 = vsub.f32 %v2197_v56, %v991_v7 }
 0x346   : > { %v2304_v53 = vpop.eup %1613  ;;  %1627 = vpow2.f32 %v1074_v6  ;;  %1143 = vadd.xlane.f32.xlu0 %v1142_v21 }
 0x347   : > { %v2306_v54 = vpop.eup %1615  ;;  %v1076_v22 = vmul.f32 1.442695, %v1030_v9  ;;  %v1078_v23 = vmul.f32 1.442695, %v1031_v10 }
 0x348   : > { %v982_v1 = vpop.xlane.xlu0 %981  ;;  %v1145_v25 = vadd.f32 %v2306_v54, %v2304_v53 }
 0x349   : > { %1629 = vpow2.f32 %v1076_v22  ;;  %v1024_v26 = vsub.f32 %v2183_v49, %v982_v1  ;;  %v1025_v27 = vsub.f32 %v2185_v50, %v982_v1 }
 0x34a   : > { %v2312_v55 = vpop.eup %1617  ;;  %1631 = vpow2.f32 %v1078_v23  ;;  %1146 = vadd.xlane.f32.xlu1 %v1145_v25 }
 0x34b   : > { %v2314_v56 = vpop.eup %1619  ;;  %v1064_v4 = vmul.f32 1.442695, %v1024_v26  ;;  %v1066_v5 = vmul.f32 1.442695, %v1025_v27 }
 0x34c   : > { %v985_v28 = vpop.xlane.xlu0 %984  ;;  %v1136_v62 = vadd.f32 %v2314_v56, %v2312_v55 }
 0x34d   : > { %1633 = vpow2.f32 %v1064_v4  ;;  %v1026_v30 = vsub.f32 %v2187_v51, %v985_v28  ;;  %v1027_v31 = vsub.f32 %v2189_v52, %v985_v28 }
 0x34e   : > { %v2320_v49 = vpop.eup %1621  ;;  %1635 = vpow2.f32 %v1066_v5  ;;  %1137 = vadd.xlane.f32.xlu0 %v1136_v62 }
 0x34f   : > { %v2322_v50 = vpop.eup %1623  ;;  %v1068_v32 = vmul.f32 1.442695, %v1026_v30  ;;  %v1070_v33 = vmul.f32 1.442695, %v1027_v31 }
 0x350   : > { %v976_v34 = vpop.xlane.xlu0 %975  ;;  %v1139_v35 = vadd.f32 %v2322_v50, %v2320_v49 }
 0x351   : > { %1637 = vpow2.f32 %v1068_v32  ;;  %v1020_v36 = vsub.f32 %v2175_v45, %v976_v34  ;;  %v1021_v37 = vsub.f32 %v2177_v46, %v976_v34 }
 0x352   : > { %v2328_v51 = vpop.eup %1625  ;;  %1639 = vpow2.f32 %v1070_v33  ;;  %1140 = vadd.xlane.f32.xlu1 %v1139_v35 }
 0x353   : > { %v2330_v52 = vpop.eup %1627  ;;  %v1056_v38 = vmul.f32 1.442695, %v1020_v36  ;;  %v1058_v39 = vmul.f32 1.442695, %v1021_v37  ;;  %v458_v36 = vld [vmem:[%s2535_s15] sm:$0xf] }
 0x354   : > { %v979_v40 = vpop.xlane.xlu0 %978  ;;  %v1130_v8 = vadd.f32 %v2330_v52, %v2328_v51  ;;  %v459_v37 = vld [vmem:[#allocation2] sm:$0x1] }
 0x355   : > { %1641 = vpow2.f32 %v1056_v38  ;;  %v1022_v15 = vsub.f32 %v2179_v47, %v979_v40  ;;  %v1023_v16 = vsub.f32 %v2181_v48, %v979_v40  ;;  %1472 = vpush %v459_v37 }
 0x356   : > { %v2336_v45 = vpop.eup %1629  ;;  %1643 = vpow2.f32 %v1058_v39  ;;  %1131 = vadd.xlane.f32.xlu0 %v1130_v8 }
 0x357   : > { %v2338_v46 = vpop.eup %1631  ;;  %v1060_v17 = vmul.f32 1.442695, %v1022_v15  ;;  %v1062_v18 = vmul.f32 1.442695, %v1023_v16 }
 0x358   : > { %v970_v19 = vpop.xlane.xlu0 %969  ;;  %v1133_v20 = vadd.f32 %v2338_v46, %v2336_v45 }
 0x359   : > { %1645 = vpow2.f32 %v1060_v17  ;;  %v1016_v6 = vsub.f32 %v2167_v41, %v970_v19  ;;  %v1017_v7 = vsub.f32 %v2169_v42, %v970_v19 }
 0x35a   : > { %v2344_v47 = vpop.eup %1633  ;;  %1647 = vpow2.f32 %v1062_v18  ;;  %1134 = vadd.xlane.f32.xlu1 %v1133_v20 }
 0x35b   : > { %v2346_v48 = vpop.eup %1635  ;;  %v1048_v21 = vmul.f32 1.442695, %v1016_v6  ;;  %v1050_v9 = vmul.f32 1.442695, %v1017_v7 }
 0x35c   : > { %v973_v10 = vpop.xlane.xlu0 %972  ;;  %v1124_v22 = vadd.f32 %v2346_v48, %v2344_v47 }
 0x35d   : > { %1649 = vpow2.f32 %v1048_v21  ;;  %v1018_v23 = vsub.f32 %v2171_v43, %v973_v10  ;;  %v1019_v1 = vsub.f32 %v2173_v44, %v973_v10 }
 0x35e   : > { %v2352_v41 = vpop.eup %1637  ;;  %1651 = vpow2.f32 %v1050_v9  ;;  %1125 = vadd.xlane.f32.xlu0 %v1124_v22 }
 0x35f   : > { %v2354_v42 = vpop.eup %1639  ;;  %v1052_v25 = vmul.f32 1.442695, %v1018_v23  ;;  %v1054_v26 = vmul.f32 1.442695, %v1019_v1 }
 0x360   : > { %v1127_v27 = vadd.f32 %v2354_v42, %v2352_v41 }
 0x361   : > { %1653 = vpow2.f32 %v1052_v25 }
 0x362   : > { %v2358_v4 = vpop.eup %1641  ;;  %1655 = vpow2.f32 %v1054_v26  ;;  %1128 = vadd.xlane.f32.xlu1 %v1127_v27 }
 0x363   : > { %v2360_v5 = vpop.eup %1643 }
 0x364   : > { %v1118_v43 = vadd.f32 %v2360_v5, %v2358_v4 }
 0x366   : > { %v2364_v44 = vpop.eup %1645  ;;  %1119 = vadd.xlane.f32.xlu0 %v1118_v43 }
 0x367   : > { %v2366_v28 = vpop.eup %1647 }
 0x368   : > { %v1121_v62 = vadd.f32 %v2366_v28, %v2364_v44 }
 0x36a   : > { %v2370_v30 = vpop.eup %1649  ;;  %1122 = vadd.xlane.f32.xlu1 %v1121_v62 }
 0x36b   : > { %v2372_v31 = vpop.eup %1651 }
 0x36c   : > { %v1112_v32 = vadd.f32 %v2372_v31, %v2370_v30 }
 0x36e   : > { %v2376_v33 = vpop.eup %1653  ;;  %1113 = vadd.xlane.f32.xlu0 %v1112_v32 }
 0x36f   : > { %v2378_v34 = vpop.eup %1655 }
 0x370   : > { %v1115_v35 = vadd.f32 %v2378_v34, %v2376_v33 }
 0x372   : > { %1116 = vadd.xlane.f32.xlu1 %v1115_v35 }
 0x384   : > { %631 = vperm.xlu0 %1590, %v458_v36  }
 0x386   : > { %s1473_s18 = spop %1472 }
 0x3bf   : > { %v1156_v38 = vpop.xlane.xlu0 %1155 }
 0x3c0   : > { %1657 = vrcp.f32 %v1156_v38 }
 0x3c3   : > { %v1159_v39 = vpop.xlane.xlu0 %1158 }
 0x3c4   : > { %1659 = vrcp.f32 %v1159_v39 }
 0x3c7   : > { %v1150_v40 = vpop.xlane.xlu0 %1149 }
 0x3c8   : > { %1661 = vrcp.f32 %v1150_v40 }
 0x3cb   : > { %v1153_v8 = vpop.xlane.xlu1 %1152 }
 0x3cc   : > { %1663 = vrcp.f32 %v1153_v8 }
 0x3cd   : > { %v1658_v15 = vpop.eup %1657 }
 0x3ce   : > { %v1205_v18 = vmul.f32 %v1658_v15, %v2266_v2  ;;  %v1204_v20 = vmul.f32 %v1658_v15, %v2264_v24 }
 0x3cf   : > { %v1144_v16 = vpop.xlane.xlu0 %1143 }
 0x3d0   : > { %1665 = vrcp.f32 %v1144_v16 }
 0x3d1   : > { %v1660_v17 = vpop.eup %1659 }
 0x3d2   : > { %v1207_v19 = vmul.f32 %v1660_v17, %v2274_v61  ;;  %v1206_v6 = vmul.f32 %v1660_v17, %v2272_v29 }
 0x3d3   : > { %v1147_v7 = vpop.xlane.xlu1 %1146 }
 0x3d4   : > { %1667 = vrcp.f32 %v1147_v7  ;;  %v1225_v21 = vpack.c.bf16 %v1207_v19, %v1205_v18  ;;  %v1224_v9 = vpack.c.bf16 %v1206_v6, %v1204_v20 }
 0x3d5   : > { %v1662_v10 = vpop.eup %1661 }
 0x3d6   : > { %1226 = vmatprep.subr.bf16.mxu0 %v1225_v21  ;;  %v1201_v1 = vmul.f32 %v1662_v10, %v2282_v0  ;;  %v1200_v61 = vmul.f32 %v1662_v10, %v2280_v63  ;;  %v709_v10 = vpop.f32.mrf.mxu0 }
 0x3d7   : > { %v1138_v22 = vpop.xlane.xlu0 %1137  ;;  %1227 = vmatpush1.bf16.xpose.msra.mxu0 %v1224_v9 }
 0x3d8   : > { %1669 = vrcp.f32 %v1138_v22 }
 0x3d9   : > { %v1664_v23 = vpop.eup %1663 }
 0x3da   : > { %v1203_v2 = vmul.f32 %v1664_v23, %v2290_v58  ;;  %v1202_v24 = vmul.f32 %v1664_v23, %v2288_v57 }
 0x3db   : > { %v1141_v25 = vpop.xlane.xlu1 %1140 }
 0x3dc   : > { %1671 = vrcp.f32 %v1141_v25  ;;  %v1223_v29 = vpack.c.bf16 %v1203_v2, %v1201_v1  ;;  %v1222_v26 = vpack.c.bf16 %v1202_v24, %v1200_v61  ;;  %v711_v2 = vpop.f32.mrf.mxu0 }
 0x3dd   : > { %v1666_v27 = vpop.eup %1665 }
 0x3de   : > { %1228 = vmatprep.subr.bf16.mxu0 %v1223_v29  ;;  %v1197_v32 = vmul.f32 %v1666_v27, %v2298_v60  ;;  %v1196_v58 = vmul.f32 %v1666_v27, %v2296_v59 }
 0x3df   : > { %v1132_v43 = vpop.xlane.xlu0 %1131  ;;  %1229 = vmatpush1.bf16.xpose.msra.mxu0 %v1222_v26 }
 0x3e0   : > { %1673 = vrcp.f32 %v1132_v43 }
 0x3e1   : > { %v1668_v62 = vpop.eup %1667 }
 0x3e2   : > { %v1199_v0 = vmul.f32 %v1668_v62, %v2306_v54  ;;  %v1198_v63 = vmul.f32 %v1668_v62, %v2304_v53 }
 0x3e3   : > { %v1135_v35 = vpop.xlane.xlu1 %1134 }
 0x3e4   : > { %1675 = vrcp.f32 %v1135_v35  ;;  %v1221_v57 = vpack.c.bf16 %v1199_v0, %v1197_v32  ;;  %v1220_v36 = vpack.c.bf16 %v1198_v63, %v1196_v58 }
 0x3e5   : > { %v1670_v37 = vpop.eup %1669 }
 0x3e6   : > { %1230 = vmatprep.subr.bf16.mxu0 %v1221_v57  ;;  %v1193_v40 = vmul.f32 %v1670_v37, %v2314_v56  ;;  %v1192_v54 = vmul.f32 %v1670_v37, %v2312_v55  ;;  %v1267_v57 = vsub.f32 1.0, %v2126_v13 }
 0x3e7   : > { %v1126_v38 = vpop.xlane.xlu0 %1125  ;;  %1231 = vmatpush1.bf16.xpose.msra.mxu0 %v1220_v36  ;;  %v1268_v36 = vstv %s1473_s18 }
 0x3e8   : > { %1677 = vrcp.f32 %v1126_v38 }
 0x3e9   : > { %v1672_v39 = vpop.eup %1671 }
 0x3ea   : > { %v1195_v60 = vmul.f32 %v1672_v39, %v2322_v50  ;;  %v1194_v59 = vmul.f32 %v1672_v39, %v2320_v49 }
 0x3eb   : > { %v1129_v8 = vpop.xlane.xlu1 %1128 }
 0x3ec   : > { %1679 = vrcp.f32 %v1129_v8  ;;  %v1219_v53 = vpack.c.bf16 %v1195_v60, %v1193_v40  ;;  %v1218_v15 = vpack.c.bf16 %v1194_v59, %v1192_v54 }
 0x3ed   : > { %v1674_v16 = vpop.eup %1673 }
 0x3ee   : > { %1232 = vmatprep.subr.bf16.mxu0 %v1219_v53  ;;  %v1189_v19 = vmul.f32 %v1674_v16, %v2330_v52  ;;  %v1188_v50 = vmul.f32 %v1674_v16, %v2328_v51 }
 0x3ef   : > { %v1120_v17 = vpop.xlane.xlu0 %1119  ;;  %1233 = vmatpush1.bf16.xpose.msra.mxu0 %v1218_v15 }
 0x3f0   : > { %1681 = vrcp.f32 %v1120_v17 }
 0x3f1   : > { %v1676_v18 = vpop.eup %1675 }
 0x3f2   : > { %v1191_v56 = vmul.f32 %v1676_v18, %v2338_v46  ;;  %v1190_v55 = vmul.f32 %v1676_v18, %v2336_v45 }
 0x3f3   : > { %v1123_v20 = vpop.xlane.xlu1 %1122 }
 0x3f4   : > { %1683 = vrcp.f32 %v1123_v20  ;;  %v1217_v49 = vpack.c.bf16 %v1191_v56, %v1189_v19  ;;  %v1216_v6 = vpack.c.bf16 %v1190_v55, %v1188_v50 }
 0x3f5   : > { %v1678_v7 = vpop.eup %1677 }
 0x3f6   : > { %1234 = vmatprep.subr.bf16.mxu0 %v1217_v49  ;;  %v1185_v22 = vmul.f32 %v1678_v7, %v2346_v48  ;;  %v1184_v46 = vmul.f32 %v1678_v7, %v2344_v47 }
 0x3f7   : > { %v1114_v21 = vpop.xlane.xlu0 %1113  ;;  %1235 = vmatpush1.bf16.xpose.msra.mxu0 %v1216_v6 }
 0x3f8   : > { %1685 = vrcp.f32 %v1114_v21 }
 0x3f9   : > { %v1680_v9 = vpop.eup %1679 }
 0x3fa   : > { %v1187_v52 = vmul.f32 %v1680_v9, %v2354_v42  ;;  %v1186_v51 = vmul.f32 %v1680_v9, %v2352_v41 }
 0x3fb   : > { %v1117_v45 = vpop.xlane.xlu1 %1116 }
 0x3fc   : > { %1687 = vrcp.f32 %v1117_v45  ;;  %v1215_v23 = vpack.c.bf16 %v1187_v52, %v1185_v22  ;;  %v1214_v1 = vpack.c.bf16 %v1186_v51, %v1184_v46 }
 0x3fd   : > { %v1682_v61 = vpop.eup %1681 }
 0x3fe   : > { %1236 = vmatprep.subr.bf16.mxu0 %v1215_v23  ;;  %v1181_v48 = vmul.f32 %v1682_v61, %v2360_v5  ;;  %v1180_v47 = vmul.f32 %v1682_v61, %v2358_v4 }
 0x3ff   : > { %v632_v24 = vpop.permute.xlu0 %631  ;;  %1237 = vmatpush1.bf16.xpose.msra.mxu0 %v1214_v1 }
 0x400   : > { %v712_v25 = vadd.f32 %v711_v2, %v632_v24  ;;  %v710_v63 = vadd.f32 %v709_v10, %v632_v24 }
 0x401   : > { %v1684_v29 = vpop.eup %1683 }
 0x402   : > { %v1209_v26 = vpack.c.bf16 %v712_v25, %v712_v25  ;;  %v1183_v42 = vmul.f32 %v1684_v29, %v2366_v28  ;;  %v1182_v41 = vmul.f32 %v1684_v29, %v2364_v44  ;;  %v1208_v35 = vpack.c.bf16 %v710_v63, %v710_v63 }
 0x404   : > { %1258 = vmatprep.mubr.bf16.mxu0 %v1209_v26  ;;  %v1213_v27 = vpack.c.bf16 %v1183_v42, %v1181_v48  ;;  %v1212_v43 = vpack.c.bf16 %v1182_v41, %v1180_v47 }
 0x405   : > { %v1686_v62 = vpop.eup %1685 }
 0x406   : > { %1238 = vmatprep.subr.bf16.mxu0 %v1213_v27  ;;  %v1177_v0 = vmul.f32 %v1686_v62, %v2372_v31  ;;  %v1176_v5 = vmul.f32 %v1686_v62, %v2370_v30  ;;  %v1269_v31 = vmul.f32 %v1268_v36, %v1267_v57 }
 0x407   : > { %1239 = vmatpush1.bf16.xpose.msra.mxu0 %v1212_v43 }
 0x408   : > { %v1274_v30 = vrot.slane %v1269_v31, %v717_v12 }
 0x409   : > { %v1688_v32 = vpop.eup %1687 }
 0x40a   : > { %v1179_v58 = vmul.f32 %v1688_v32, %v2378_v34  ;;  %v1178_v28 = vmul.f32 %v1688_v32, %v2376_v33  ;;  %v1266_v33 = vmul.f32 %v2131_v14, %v2099_v3 }
 0x40c   : > { %v1211_v4 = vpack.c.bf16 %v1179_v58, %v1177_v0  ;;  %v1210_v44 = vpack.c.bf16 %v1178_v28, %v1176_v5 }
 0x40e   : > { %1240 = vmatprep.subr.bf16.mxu0 %v1211_v4 }
 0x40f   : > { %1241 = vmatpush1.bf16.xpose.msra.mxu0 %v1210_v44 }
 0x416   : > { %1259 = vmatmul.mubr.bf16.vlgmr.msra.gmra.mxu0 %v1208_v35 }
 0x4d6   : > { %v1260_v34 = vpop.f32.mrf.mxu0 }
 0x4d7   : > { %v1276_v37 = vmul.f32 %v1274_v30, %v1260_v34 }
 0x4d8   : > { %v1262_v38 = vpop.f32.mrf.mxu0 }
 0x4d9   : > { %v1277_v13 = vadd.f32 %v1276_v37, %v1266_v33 }
 0x4da   : > { %v1263_v11 = vpop.f32.mrf.mxu0 }
 0x4db   : > { %1278 = vst [vmem:[%s432_s6] sm:$0xf] %v1277_v13 }
 0x4dc   : > { %v1264_v3 = vpop.f32.mrf.mxu0 }
 0x4dd   : > { %1756 = shalt.err (!%p1753_p12)
}
 0x4de   : > { %s1757_s15 = scalar_lea.hbm %s2428_s29, 64  ;;  %s1761_s8 = scalar_lea.hbm %s2538_s7, 256 }
 0x4df   : > { %p1758_p9 = scmp.ne.s32.totalorder %s2428_s29, %s1757_s15  ;;  %p1762_p13 = scmp.lt.s32.totalorder %s2428_s29, %s2538_s7 }
 0x4e0   : > { %p1763_p6 = scmp.lt.s32.totalorder %s1761_s8, %s1757_s15 }
 0x4e1   : > { %p1759_p0 = pnand %p1758_p9, %p2539_p3 }
 0x4e2   : > { %p1764_p7 = por %p1763_p6, %p1762_p13 }
 0x4e3   : > { %p1760_p2 = pneg %p1759_p0 }
 0x4e5   : > { %p1765_p1 = pnand %p1764_p7, %p1760_p2 }
 0x4e7   : > { %1768 = shalt.err (!%p1765_p1)
}
 0x4e8   : > { %1480 = dma.vmem_to_hbm [thread:$0]  (%p2539_p3), %s2430_s27, 64, %s2428_s29, %s1280_s21  }
 0x4e9 PF: > { %s2540_s10 = sld [smem:[#allocation12_spill]]  ;;  %p1497_p11 = scmp.ge.s32.totalorder %s1867_s24, 2 }
 0x4ea   : > { %s2541_s25 = sld [smem:[#allocation16_spill]] }
 0x4ef   : > { %s1307_s6 = sand.u32 1, %s2540_s10  }
 0x4f0   : > { %p2542_p4 = scmp.ne.s32.totalorder %s2541_s25, 0  ;;  %s1308_s12 = scalar_lea.sflag [#allocation5], %s1307_s6 }
 0x4f2   : > { %p1491_p5 = pnand %p1497_p11, %p2542_p4 }
 0x4f4   : > { %p1492_p8 = pneg %p1491_p5 }
 0x4f6   : > { %1822 = dma.done.wait (%p1492_p8), %s1308_s12, 64  }
 0x4f7   : > { %1824 = vsyncadd (%p1492_p8), %s1308_s12, 4294967232  ;;  %s29_s24 = sadd.s32 1, %s1867_s24   ;;  %s2543_s15 = sld [smem:[#allocation13_spill]] }
 0x4f8   : > { %p26_p10 = scmp.ge.s32.totalorder %s29_s24, 6   ;;  %s2544_s21 = sld [smem:[#allocation14_spill]] }
 0x4f9   : > { %s2545_s27 = sld [smem:[#allocation17_spill]]  ;;  %s2547_s16 = smov %s1835_s17 }
 0x4fa   : > { %s2546_s13 = sld [smem:[#allocation18_spill]]  ;;  %s2548_s17 = smov %s2053_s22 }
 0x4fb   : > { %s2549_s18 = smov %s1843_s19  ;;  %s2550_s19 = smov %s1847_s20 }
 0x4fc   : > { %s2551_s20 = smov %s2048_s30  ;;  %s2552_s9 = smov %s1863_s23 }
 0x4fd   :  { %28 = sbr.rel (!%p26_p10) target bundleno = 17 (0x11), region = 117 }
 0x4ff   : > { %s2553_s22 = smov %s2545_s27 }
 0x500   : > { %s2554_s23 = smov %s2546_s13 }
 0x502   :  { %1313 = vsyncpa [#allocation4], 1 }
 0x503   :  { %1315 = vsyncpa [#allocation4 + $0x1], 1 }
 0x504   :  { %1316 = vsyncpa [#allocation7], 1 }
 0x505   :  { %1317 = vsyncpa [#allocation5], 1 }
 0x506   :  { %1319 = vsyncpa [#allocation5 + $0x1], 1 }

</bundles_post_ra>
